<compile_context>
chip_gen: v5e
topology: v5e:2x2
jax: 0.10.0
libtpu: 0.0.40
codegen_flags: <defaults>
</compile_context>

<pallas_src>
import math

import numpy as np
import jax
import jax.numpy as jnp
from jax.experimental import pallas as pl
from jax.experimental.pallas import tpu as pltpu

# ---- small config consistent with the module ----
BATCH = 2
SEQ = 8
HIDDEN = 32
NUM_HEADS = 4
HEAD_DIM = HIDDEN // NUM_HEADS
INTERMEDIATE = 64
RMS_EPS = 1e-6
ROPE_BASE = 10000.0
MAX_POS = 32

ROWS = BATCH * SEQ                       # flattened (batch, seq) rows
NEG_CLAMP = float(jnp.finfo(jnp.float32).min)
MASK_NEG = -1e9

assert SEQ & (SEQ - 1) == 0, "SEQ must be a power of two for the shift-based mask"
SEQ_SHIFT = SEQ.bit_length() - 1


def _rms_norm(x, w, eps):
    # x: (R, H), w: (1, H)
    var = jnp.mean(x * x, axis=-1, keepdims=True)
    return (x * jax.lax.rsqrt(var + eps)) * w


def decoder_layer_kernel(x_ref, cos_ref, sin_ref, ln1_ref, ln2_ref,
                         wqkv_ref, wo_ref, wgu_ref, wd_ref, out_ref):
    H, D, NH, I = HIDDEN, HEAD_DIM, NUM_HEADS, INTERMEDIATE

    x = x_ref[...]            # (ROWS, H) -- batch*seq flattened
    cos = cos_ref[...]        # (ROWS, H) -- cos tiled across heads
    sin = sin_ref[...]        # (ROWS, H)

    # ---- input_layernorm ----
    h = _rms_norm(x, ln1_ref[...], RMS_EPS)

    # ---- fused projection: [q | rotate_half(q) | k | rotate_half(k) | v] ----
    # rotate_half is a signed permutation folded into the weights in the wrapper,
    # so RoPE here is purely element-wise (no per-head lane shuffles).
    qkv = jnp.dot(h, wqkv_ref[...], preferred_element_type=jnp.float32)  # (ROWS, 5H)
    q, qr = qkv[:, 0 * H:1 * H], qkv[:, 1 * H:2 * H]
    k, kr = qkv[:, 2 * H:3 * H], qkv[:, 3 * H:4 * H]
    v = qkv[:, 4 * H:5 * H]
    q = q * cos + qr * sin
    k = k * cos + kr * sin

    # ---- causal + batch-block mask, generated in-kernel (no mask DMA) ----
    row = jax.lax.broadcasted_iota(jnp.int32, (ROWS, ROWS), 0)
    col = jax.lax.broadcasted_iota(jnp.int32, (ROWS, ROWS), 1)
    same_batch = jnp.right_shift(row, SEQ_SHIFT) == jnp.right_shift(col, SEQ_SHIFT)
    allowed = same_batch & (col <= row)
    mask_add = jnp.where(allowed, 0.0, MASK_NEG)

    # ---- attention over flattened rows; cross-batch terms killed by the mask.
    #      o_proj accumulated per head (no concatenate). ----
    wo = wo_ref[...]
    scale = 1.0 / math.sqrt(D)
    attn = jnp.zeros((ROWS, H), jnp.float32)
    for hd in range(NH):
        lo, hi = hd * D, (hd + 1) * D
        qh, kh, vh = q[:, lo:hi], k[:, lo:hi], v[:, lo:hi]
        s = jnp.dot(qh, kh.T, preferred_element_type=jnp.float32) * scale + mask_add
        s = jnp.maximum(s, NEG_CLAMP)              # mirrors torch.max(w, finfo.min)
        s = s - jnp.max(s, axis=-1, keepdims=True)
        p = jnp.exp(s)
        p = p * pl.reciprocal(jnp.sum(p, axis=-1, keepdims=True), approx=True)
        ctx = jnp.dot(p, vh, preferred_element_type=jnp.float32)        # (ROWS, D)
        attn = attn + jnp.dot(ctx, wo[lo:hi, :], preferred_element_type=jnp.float32)

    h2 = x + attn                                   # residual 1

    # ---- post_attention_layernorm + fused SiLU-gated MLP ----
    h3 = _rms_norm(h2, ln2_ref[...], RMS_EPS)
    gu = jnp.dot(h3, wgu_ref[...], preferred_element_type=jnp.float32)  # (ROWS, 128)
    gate, up = gu[:, :I], gu[:, I:]
    act = gate * jax.nn.sigmoid(gate)               # SiLU
    mlp = jnp.dot(act * up, wd_ref[...], preferred_element_type=jnp.float32)

    out_ref[...] = h2 + mlp                         # residual 2


def _rotate_half_matrix():
    """rotate_half(q) == q @ R, applied independently per head block."""
    half = HEAD_DIM // 2
    r = np.zeros((HIDDEN, HIDDEN), np.float32)
    for h in range(NUM_HEADS):
        b = h * HEAD_DIM
        for j in range(half):
            r[b + j + half, b + j] = -1.0   # out[:, b+j]      = -q[:, b+j+half]
            r[b + j, b + j + half] = 1.0    # out[:, b+j+half] =  q[:, b+j]
    return jnp.asarray(r)


def llama_decoder_layer(x, cos_sel, sin_sel, p):
    B, S, H = x.shape
    I = INTERMEDIATE

    # Fold rotate_half into the q/k weights and fuse all projections (done once,
    # outside the kernel).
    R = _rotate_half_matrix()
    wqkv = jnp.concatenate(
        [p["wq"], p["wq"] @ R, p["wk"], p["wk"] @ R, p["wv"]], axis=1)   # (H, 5H)
    wgu = jnp.concatenate([p["wg"], p["wu"]], axis=1)                    # (H, 2I)

    x2d = x.reshape(B * S, H)
    cos2d = jnp.tile(cos_sel, (1, 1, NUM_HEADS)).reshape(B * S, H)
    sin2d = jnp.tile(sin_sel, (1, 1, NUM_HEADS)).reshape(B * S, H)

    def full(shape):
        n = len(shape)
        return pl.BlockSpec(shape, lambda i: (0,) * n)

    out2d = pl.pallas_call(
        decoder_layer_kernel,
        out_shape=jax.ShapeDtypeStruct((B * S, H), jnp.float32),
        grid=(1,),                                   # single step: whole problem resident
        in_specs=[
            full((B * S, H)),                        # hidden_states (flattened)
            full((B * S, H)),                        # cos (tiled per head)
            full((B * S, H)),                        # sin (tiled per head)
            full((1, H)), full((1, H)),              # ln1, ln2
            full((H, 5 * H)),                        # fused q|q@R|k|k@R|v
            full((H, H)),                            # wo
            full((H, 2 * I)),                        # fused gate|up  (32, 128)
            full((I, H)),                            # down
        ],
        out_specs=full((B * S, H)),
        compiler_params=pltpu.CompilerParams(dimension_semantics=("arbitrary",)),
    )(x2d, cos2d, sin2d, p["ln1"], p["ln2"], wqkv, p["wo"], wgu, p["wd"])
    return out2d.reshape(B, S, H)


# ---------------- pure-JAX reference (mirrors the PyTorch forward) ----------------
def reference(x, mask, cos_sel, sin_sel, p):
    def rms(v, w):
        var = jnp.mean(v * v, axis=-1, keepdims=True)
        return (v * jax.lax.rsqrt(var + RMS_EPS)) * w[0]

    def rot_half(v):
        d = v.shape[-1]
        return jnp.concatenate([-v[..., d // 2:], v[..., : d // 2]], axis=-1)

    B, S, H = x.shape
    h = rms(x, p["ln1"])
    q = (h @ p["wq"]).reshape(B, S, NUM_HEADS, HEAD_DIM).transpose(0, 2, 1, 3)
    k = (h @ p["wk"]).reshape(B, S, NUM_HEADS, HEAD_DIM).transpose(0, 2, 1, 3)
    v = (h @ p["wv"]).reshape(B, S, NUM_HEADS, HEAD_DIM).transpose(0, 2, 1, 3)
    cos = cos_sel[:, None, :, :]
    sin = sin_sel[:, None, :, :]
    q = q * cos + rot_half(q) * sin
    k = k * cos + rot_half(k) * sin
    scores = jnp.einsum("bhqd,bhkd->bhqk", q, k) / math.sqrt(HEAD_DIM)
    scores = scores + mask
    scores = jnp.maximum(scores, NEG_CLAMP)
    w = jax.nn.softmax(scores.astype(jnp.float32), axis=-1)
    attn = jnp.einsum("bhqk,bhkd->bhqd", w, v)
    attn = attn.transpose(0, 2, 1, 3).reshape(B, S, H) @ p["wo"]
    h2 = x + attn
    h3 = rms(h2, p["ln2"])
    gate = h3 @ p["wg"]
    up = h3 @ p["wu"]
    mlp = (jax.nn.silu(gate) * up) @ p["wd"]
    return h2 + mlp


def make_params(key):
    ks = jax.random.split(key, 7)
    s = 0.05
    return {
        "ln1": jnp.ones((1, HIDDEN), jnp.float32),
        "ln2": jnp.ones((1, HIDDEN), jnp.float32),
        "wq": jax.random.normal(ks[0], (HIDDEN, HIDDEN), jnp.float32) * s,
        "wk": jax.random.normal(ks[1], (HIDDEN, HIDDEN), jnp.float32) * s,
        "wv": jax.random.normal(ks[2], (HIDDEN, HIDDEN), jnp.float32) * s,
        "wo": jax.random.normal(ks[3], (HIDDEN, HIDDEN), jnp.float32) * s,
        "wg": jax.random.normal(ks[4], (HIDDEN, INTERMEDIATE), jnp.float32) * s,
        "wu": jax.random.normal(ks[5], (HIDDEN, INTERMEDIATE), jnp.float32) * s,
        "wd": jax.random.normal(ks[6], (INTERMEDIATE, HIDDEN), jnp.float32) * s,
    }


if __name__ == "__main__":
    key = jax.random.PRNGKey(0)
    kx, kp = jax.random.split(key)

    x = jax.random.normal(kx, (BATCH, SEQ, HIDDEN), jnp.float32)
    params = make_params(kp)

    # causal attention mask (reference only; the kernel generates it in-VMEM)
    causal = jnp.tril(jnp.ones((SEQ, SEQ), jnp.float32))
    mask = jnp.where(causal == 1.0, 0.0, MASK_NEG)
    mask = jnp.broadcast_to(mask[None, None], (BATCH, 1, SEQ, SEQ))

    # rotary embedding cache + gather by position_ids (= arange) — glue in plain JAX
    inv_freq = 1.0 / (ROPE_BASE ** (jnp.arange(0, HEAD_DIM, 2, dtype=jnp.float32) / HEAD_DIM))
    t = jnp.arange(MAX_POS, dtype=jnp.float32)
    freqs = jnp.einsum("i,j->ij", t, inv_freq)
    emb = jnp.concatenate([freqs, freqs], axis=-1)           # (MAX_POS, D)
    cos_cached = jnp.cos(emb)
    sin_cached = jnp.sin(emb)
    position_ids = jnp.broadcast_to(jnp.arange(SEQ), (BATCH, SEQ))
    cos_sel = cos_cached[position_ids]                       # (B, S, D)
    sin_sel = sin_cached[position_ids]                       # (B, S, D)

    out = llama_decoder_layer(x, cos_sel, sin_sel, params)
    out = jax.block_until_ready(out)

    ref = reference(x, mask, cos_sel, sin_sel, params)
    assert out.shape == (BATCH, SEQ, HIDDEN)
    # tolerance absorbs the EUP approximate-reciprocal softmax normalization
    assert jnp.allclose(out, ref, atol=2e-3, rtol=2e-3), "mismatch vs reference"

    print("KERNEL_OK")
</pallas_src>

<mosaic_0001>
module attributes {stable_mosaic.version = 11 : i64} {
  func.func @decoder_layer_kernel(%arg0: i32, %arg1: memref<16x32xf32, #tpu.memory_space<vmem>>, %arg2: memref<16x32xf32, #tpu.memory_space<vmem>>, %arg3: memref<16x32xf32, #tpu.memory_space<vmem>>, %arg4: memref<1x32xf32, #tpu.memory_space<vmem>>, %arg5: memref<1x32xf32, #tpu.memory_space<vmem>>, %arg6: memref<32x160xf32, #tpu.memory_space<vmem>>, %arg7: memref<32x32xf32, #tpu.memory_space<vmem>>, %arg8: memref<32x128xf32, #tpu.memory_space<vmem>>, %arg9: memref<64x32xf32, #tpu.memory_space<vmem>>, %arg10: memref<16x32xf32, #tpu.memory_space<vmem>>) attributes {dimension_semantics = [#tpu.dimension_semantics<arbitrary>], iteration_bounds = array<i64: 1>, scalar_prefetch = 0 : i64, scratch_operands = 0 : i64, tpu.core_type = #tpu.core_type<tc>, window_params = [{pipeline_mode = #tpu.pipeline_mode<synchronous>, transform_indices = @transform_0, window_bounds = array<i64: 16, 32>}, {pipeline_mode = #tpu.pipeline_mode<synchronous>, transform_indices = @transform_1, window_bounds = array<i64: 16, 32>}, {pipeline_mode = #tpu.pipeline_mode<synchronous>, transform_indices = @transform_2, window_bounds = array<i64: 16, 32>}, {pipeline_mode = #tpu.pipeline_mode<synchronous>, transform_indices = @transform_3, window_bounds = array<i64: 1, 32>}, {pipeline_mode = #tpu.pipeline_mode<synchronous>, transform_indices = @transform_4, window_bounds = array<i64: 1, 32>}, {pipeline_mode = #tpu.pipeline_mode<synchronous>, transform_indices = @transform_5, window_bounds = array<i64: 32, 160>}, {pipeline_mode = #tpu.pipeline_mode<synchronous>, transform_indices = @transform_6, window_bounds = array<i64: 32, 32>}, {pipeline_mode = #tpu.pipeline_mode<synchronous>, transform_indices = @transform_7, window_bounds = array<i64: 32, 128>}, {pipeline_mode = #tpu.pipeline_mode<synchronous>, transform_indices = @transform_8, window_bounds = array<i64: 64, 32>}, {pipeline_mode = #tpu.pipeline_mode<synchronous>, transform_indices = @transform_9, window_bounds = array<i64: 16, 32>}]} {
    %c0 = arith.constant 0 : index
    %c0_0 = arith.constant 0 : index
    %0 = vector.load %arg1[%c0, %c0_0] : memref<16x32xf32, #tpu.memory_space<vmem>>, vector<16x32xf32>
    %c0_1 = arith.constant 0 : index
    %c0_2 = arith.constant 0 : index
    %1 = vector.load %arg2[%c0_1, %c0_2] : memref<16x32xf32, #tpu.memory_space<vmem>>, vector<16x32xf32>
    %c0_3 = arith.constant 0 : index
    %c0_4 = arith.constant 0 : index
    %2 = vector.load %arg3[%c0_3, %c0_4] : memref<16x32xf32, #tpu.memory_space<vmem>>, vector<16x32xf32>
    %c0_5 = arith.constant 0 : index
    %c0_6 = arith.constant 0 : index
    %3 = vector.load %arg4[%c0_5, %c0_6] : memref<1x32xf32, #tpu.memory_space<vmem>>, vector<1x32xf32>
    %4 = arith.mulf %0, %0 : vector<16x32xf32>
    %cst = arith.constant dense<0.000000e+00> : vector<16xf32>
    %5 = vector.multi_reduction <add>, %4, %cst [1] : vector<16x32xf32> to vector<16xf32>
    %6 = vector.shape_cast %5 : vector<16xf32> to vector<16x1xf32>
    %cst_7 = arith.constant 3.200000e+01 : f32
    %7 = vector.broadcast %cst_7 : f32 to vector<16x1xf32>
    %8 = arith.divf %6, %7 : vector<16x1xf32>
    %cst_8 = arith.constant 9.99999997E-7 : f32
    %9 = vector.broadcast %cst_8 : f32 to vector<16x1xf32>
    %10 = arith.addf %8, %9 : vector<16x1xf32>
    %11 = math.rsqrt %10 : vector<16x1xf32>
    %12 = vector.broadcast %11 : vector<16x1xf32> to vector<16x32xf32>
    %13 = arith.mulf %0, %12 : vector<16x32xf32>
    %14 = vector.broadcast %3 : vector<1x32xf32> to vector<16x32xf32>
    %15 = arith.mulf %13, %14 : vector<16x32xf32>
    %c0_9 = arith.constant 0 : index
    %c0_10 = arith.constant 0 : index
    %16 = vector.load %arg6[%c0_9, %c0_10] : memref<32x160xf32, #tpu.memory_space<vmem>>, vector<32x160xf32>
    %cst_11 = arith.constant dense<0.000000e+00> : vector<16x160xf32>
    %17 = tpu.matmul %15, %16, %cst_11 {dimension_numbers = #tpu.dot_dimension_numbers<[1], [0], [0], [1], [0, 0, 1, 1], [], []>} : vector<16x32xf32>, vector<32x160xf32>, vector<16x160xf32> -> vector<16x160xf32>
    %18 = vector.extract_strided_slice %17 {offsets = [0, 0], sizes = [16, 32], strides = [1, 1]} : vector<16x160xf32> to vector<16x32xf32>
    %19 = vector.extract_strided_slice %17 {offsets = [0, 32], sizes = [16, 32], strides = [1, 1]} : vector<16x160xf32> to vector<16x32xf32>
    %20 = vector.extract_strided_slice %17 {offsets = [0, 64], sizes = [16, 32], strides = [1, 1]} : vector<16x160xf32> to vector<16x32xf32>
    %21 = vector.extract_strided_slice %17 {offsets = [0, 96], sizes = [16, 32], strides = [1, 1]} : vector<16x160xf32> to vector<16x32xf32>
    %22 = vector.extract_strided_slice %17 {offsets = [0, 128], sizes = [16, 32], strides = [1, 1]} : vector<16x160xf32> to vector<16x32xf32>
    %23 = arith.mulf %18, %1 : vector<16x32xf32>
    %24 = arith.mulf %19, %2 : vector<16x32xf32>
    %25 = arith.addf %23, %24 : vector<16x32xf32>
    %26 = arith.mulf %20, %1 : vector<16x32xf32>
    %27 = arith.mulf %21, %2 : vector<16x32xf32>
    %28 = arith.addf %26, %27 : vector<16x32xf32>
    %29 = tpu.iota {dimensions = array<i32: 0>} : vector<16x16xi32>
    %30 = tpu.iota {dimensions = array<i32: 1>} : vector<16x16xi32>
    %c3_i32 = arith.constant 3 : i32
    %31 = vector.broadcast %c3_i32 : i32 to vector<16x16xi32>
    %32 = arith.shrsi %29, %31 : vector<16x16xi32>
    %c3_i32_12 = arith.constant 3 : i32
    %33 = vector.broadcast %c3_i32_12 : i32 to vector<16x16xi32>
    %34 = arith.shrsi %30, %33 : vector<16x16xi32>
    %35 = arith.cmpi eq, %32, %34 : vector<16x16xi32>
    %36 = arith.cmpi sle, %30, %29 : vector<16x16xi32>
    %37 = arith.andi %35, %36 : vector<16x16xi1>
    %cst_13 = arith.constant 0.000000e+00 : f32
    %cst_14 = arith.constant -1.000000e+09 : f32
    %38 = vector.broadcast %cst_13 : f32 to vector<16x16xf32>
    %39 = vector.broadcast %cst_14 : f32 to vector<16x16xf32>
    %40 = arith.select %37, %38, %39 : vector<16x16xi1>, vector<16x16xf32>
    %c0_15 = arith.constant 0 : index
    %c0_16 = arith.constant 0 : index
    %41 = vector.load %arg7[%c0_15, %c0_16] : memref<32x32xf32, #tpu.memory_space<vmem>>, vector<32x32xf32>
    %cst_17 = arith.constant 0.000000e+00 : f32
    %42 = vector.broadcast %cst_17 : f32 to vector<16x32xf32>
    %43 = vector.extract_strided_slice %25 {offsets = [0, 0], sizes = [16, 8], strides = [1, 1]} : vector<16x32xf32> to vector<16x8xf32>
    %44 = vector.extract_strided_slice %28 {offsets = [0, 0], sizes = [16, 8], strides = [1, 1]} : vector<16x32xf32> to vector<16x8xf32>
    %45 = vector.extract_strided_slice %22 {offsets = [0, 0], sizes = [16, 8], strides = [1, 1]} : vector<16x32xf32> to vector<16x8xf32>
    %46 = tpu.transpose %44, [1, 0] : vector<16x8xf32> -> vector<8x16xf32>
    %cst_18 = arith.constant dense<0.000000e+00> : vector<16x16xf32>
    %47 = tpu.matmul %43, %46, %cst_18 {dimension_numbers = #tpu.dot_dimension_numbers<[1], [0], [0], [1], [0, 0, 1, 1], [], []>} : vector<16x8xf32>, vector<8x16xf32>, vector<16x16xf32> -> vector<16x16xf32>
    %cst_19 = arith.constant 0.353553385 : f32
    %48 = vector.broadcast %cst_19 : f32 to vector<16x16xf32>
    %49 = arith.mulf %47, %48 : vector<16x16xf32>
    %50 = arith.addf %49, %40 : vector<16x16xf32>
    %cst_20 = arith.constant -3.40282347E+38 : f32
    %51 = vector.broadcast %cst_20 : f32 to vector<16x16xf32>
    %52 = arith.maximumf %50, %51 : vector<16x16xf32>
    %cst_21 = arith.constant dense<0xFF800000> : vector<16xf32>
    %53 = vector.multi_reduction <maximumf>, %52, %cst_21 [1] : vector<16x16xf32> to vector<16xf32>
    %54 = vector.shape_cast %53 : vector<16xf32> to vector<16x1xf32>
    %55 = vector.broadcast %54 : vector<16x1xf32> to vector<16x16xf32>
    %56 = arith.subf %52, %55 : vector<16x16xf32>
    %57 = math.exp %56 : vector<16x16xf32>
    %cst_22 = arith.constant dense<0.000000e+00> : vector<16xf32>
    %58 = vector.multi_reduction <add>, %57, %cst_22 [1] : vector<16x16xf32> to vector<16xf32>
    %59 = vector.shape_cast %58 : vector<16xf32> to vector<16x1xf32>
    %60 = tpu.reciprocal %59 {approx = true} : vector<16x1xf32> -> vector<16x1xf32>
    %61 = vector.broadcast %60 : vector<16x1xf32> to vector<16x16xf32>
    %62 = arith.mulf %57, %61 : vector<16x16xf32>
    %cst_23 = arith.constant dense<0.000000e+00> : vector<16x8xf32>
    %63 = tpu.matmul %62, %45, %cst_23 {dimension_numbers = #tpu.dot_dimension_numbers<[1], [0], [0], [1], [0, 0, 1, 1], [], []>} : vector<16x16xf32>, vector<16x8xf32>, vector<16x8xf32> -> vector<16x8xf32>
    %64 = vector.extract_strided_slice %41 {offsets = [0, 0], sizes = [8, 32], strides = [1, 1]} : vector<32x32xf32> to vector<8x32xf32>
    %cst_24 = arith.constant dense<0.000000e+00> : vector<16x32xf32>
    %65 = tpu.matmul %63, %64, %cst_24 {dimension_numbers = #tpu.dot_dimension_numbers<[1], [0], [0], [1], [0, 0, 1, 1], [], []>} : vector<16x8xf32>, vector<8x32xf32>, vector<16x32xf32> -> vector<16x32xf32>
    %66 = arith.addf %42, %65 : vector<16x32xf32>
    %67 = vector.extract_strided_slice %25 {offsets = [0, 8], sizes = [16, 8], strides = [1, 1]} : vector<16x32xf32> to vector<16x8xf32>
    %68 = vector.extract_strided_slice %28 {offsets = [0, 8], sizes = [16, 8], strides = [1, 1]} : vector<16x32xf32> to vector<16x8xf32>
    %69 = vector.extract_strided_slice %22 {offsets = [0, 8], sizes = [16, 8], strides = [1, 1]} : vector<16x32xf32> to vector<16x8xf32>
    %70 = tpu.transpose %68, [1, 0] : vector<16x8xf32> -> vector<8x16xf32>
    %cst_25 = arith.constant dense<0.000000e+00> : vector<16x16xf32>
    %71 = tpu.matmul %67, %70, %cst_25 {dimension_numbers = #tpu.dot_dimension_numbers<[1], [0], [0], [1], [0, 0, 1, 1], [], []>} : vector<16x8xf32>, vector<8x16xf32>, vector<16x16xf32> -> vector<16x16xf32>
    %cst_26 = arith.constant 0.353553385 : f32
    %72 = vector.broadcast %cst_26 : f32 to vector<16x16xf32>
    %73 = arith.mulf %71, %72 : vector<16x16xf32>
    %74 = arith.addf %73, %40 : vector<16x16xf32>
    %cst_27 = arith.constant -3.40282347E+38 : f32
    %75 = vector.broadcast %cst_27 : f32 to vector<16x16xf32>
    %76 = arith.maximumf %74, %75 : vector<16x16xf32>
    %cst_28 = arith.constant dense<0xFF800000> : vector<16xf32>
    %77 = vector.multi_reduction <maximumf>, %76, %cst_28 [1] : vector<16x16xf32> to vector<16xf32>
    %78 = vector.shape_cast %77 : vector<16xf32> to vector<16x1xf32>
    %79 = vector.broadcast %78 : vector<16x1xf32> to vector<16x16xf32>
    %80 = arith.subf %76, %79 : vector<16x16xf32>
    %81 = math.exp %80 : vector<16x16xf32>
    %cst_29 = arith.constant dense<0.000000e+00> : vector<16xf32>
    %82 = vector.multi_reduction <add>, %81, %cst_29 [1] : vector<16x16xf32> to vector<16xf32>
    %83 = vector.shape_cast %82 : vector<16xf32> to vector<16x1xf32>
    %84 = tpu.reciprocal %83 {approx = true} : vector<16x1xf32> -> vector<16x1xf32>
    %85 = vector.broadcast %84 : vector<16x1xf32> to vector<16x16xf32>
    %86 = arith.mulf %81, %85 : vector<16x16xf32>
    %cst_30 = arith.constant dense<0.000000e+00> : vector<16x8xf32>
    %87 = tpu.matmul %86, %69, %cst_30 {dimension_numbers = #tpu.dot_dimension_numbers<[1], [0], [0], [1], [0, 0, 1, 1], [], []>} : vector<16x16xf32>, vector<16x8xf32>, vector<16x8xf32> -> vector<16x8xf32>
    %88 = vector.extract_strided_slice %41 {offsets = [8, 0], sizes = [8, 32], strides = [1, 1]} : vector<32x32xf32> to vector<8x32xf32>
    %cst_31 = arith.constant dense<0.000000e+00> : vector<16x32xf32>
    %89 = tpu.matmul %87, %88, %cst_31 {dimension_numbers = #tpu.dot_dimension_numbers<[1], [0], [0], [1], [0, 0, 1, 1], [], []>} : vector<16x8xf32>, vector<8x32xf32>, vector<16x32xf32> -> vector<16x32xf32>
    %90 = arith.addf %66, %89 : vector<16x32xf32>
    %91 = vector.extract_strided_slice %25 {offsets = [0, 16], sizes = [16, 8], strides = [1, 1]} : vector<16x32xf32> to vector<16x8xf32>
    %92 = vector.extract_strided_slice %28 {offsets = [0, 16], sizes = [16, 8], strides = [1, 1]} : vector<16x32xf32> to vector<16x8xf32>
    %93 = vector.extract_strided_slice %22 {offsets = [0, 16], sizes = [16, 8], strides = [1, 1]} : vector<16x32xf32> to vector<16x8xf32>
    %94 = tpu.transpose %92, [1, 0] : vector<16x8xf32> -> vector<8x16xf32>
    %cst_32 = arith.constant dense<0.000000e+00> : vector<16x16xf32>
    %95 = tpu.matmul %91, %94, %cst_32 {dimension_numbers = #tpu.dot_dimension_numbers<[1], [0], [0], [1], [0, 0, 1, 1], [], []>} : vector<16x8xf32>, vector<8x16xf32>, vector<16x16xf32> -> vector<16x16xf32>
    %cst_33 = arith.constant 0.353553385 : f32
    %96 = vector.broadcast %cst_33 : f32 to vector<16x16xf32>
    %97 = arith.mulf %95, %96 : vector<16x16xf32>
    %98 = arith.addf %97, %40 : vector<16x16xf32>
    %cst_34 = arith.constant -3.40282347E+38 : f32
    %99 = vector.broadcast %cst_34 : f32 to vector<16x16xf32>
    %100 = arith.maximumf %98, %99 : vector<16x16xf32>
    %cst_35 = arith.constant dense<0xFF800000> : vector<16xf32>
    %101 = vector.multi_reduction <maximumf>, %100, %cst_35 [1] : vector<16x16xf32> to vector<16xf32>
    %102 = vector.shape_cast %101 : vector<16xf32> to vector<16x1xf32>
    %103 = vector.broadcast %102 : vector<16x1xf32> to vector<16x16xf32>
    %104 = arith.subf %100, %103 : vector<16x16xf32>
    %105 = math.exp %104 : vector<16x16xf32>
    %cst_36 = arith.constant dense<0.000000e+00> : vector<16xf32>
    %106 = vector.multi_reduction <add>, %105, %cst_36 [1] : vector<16x16xf32> to vector<16xf32>
    %107 = vector.shape_cast %106 : vector<16xf32> to vector<16x1xf32>
    %108 = tpu.reciprocal %107 {approx = true} : vector<16x1xf32> -> vector<16x1xf32>
    %109 = vector.broadcast %108 : vector<16x1xf32> to vector<16x16xf32>
    %110 = arith.mulf %105, %109 : vector<16x16xf32>
    %cst_37 = arith.constant dense<0.000000e+00> : vector<16x8xf32>
    %111 = tpu.matmul %110, %93, %cst_37 {dimension_numbers = #tpu.dot_dimension_numbers<[1], [0], [0], [1], [0, 0, 1, 1], [], []>} : vector<16x16xf32>, vector<16x8xf32>, vector<16x8xf32> -> vector<16x8xf32>
    %112 = vector.extract_strided_slice %41 {offsets = [16, 0], sizes = [8, 32], strides = [1, 1]} : vector<32x32xf32> to vector<8x32xf32>
    %cst_38 = arith.constant dense<0.000000e+00> : vector<16x32xf32>
    %113 = tpu.matmul %111, %112, %cst_38 {dimension_numbers = #tpu.dot_dimension_numbers<[1], [0], [0], [1], [0, 0, 1, 1], [], []>} : vector<16x8xf32>, vector<8x32xf32>, vector<16x32xf32> -> vector<16x32xf32>
    %114 = arith.addf %90, %113 : vector<16x32xf32>
    %115 = vector.extract_strided_slice %25 {offsets = [0, 24], sizes = [16, 8], strides = [1, 1]} : vector<16x32xf32> to vector<16x8xf32>
    %116 = vector.extract_strided_slice %28 {offsets = [0, 24], sizes = [16, 8], strides = [1, 1]} : vector<16x32xf32> to vector<16x8xf32>
    %117 = vector.extract_strided_slice %22 {offsets = [0, 24], sizes = [16, 8], strides = [1, 1]} : vector<16x32xf32> to vector<16x8xf32>
    %118 = tpu.transpose %116, [1, 0] : vector<16x8xf32> -> vector<8x16xf32>
    %cst_39 = arith.constant dense<0.000000e+00> : vector<16x16xf32>
    %119 = tpu.matmul %115, %118, %cst_39 {dimension_numbers = #tpu.dot_dimension_numbers<[1], [0], [0], [1], [0, 0, 1, 1], [], []>} : vector<16x8xf32>, vector<8x16xf32>, vector<16x16xf32> -> vector<16x16xf32>
    %cst_40 = arith.constant 0.353553385 : f32
    %120 = vector.broadcast %cst_40 : f32 to vector<16x16xf32>
    %121 = arith.mulf %119, %120 : vector<16x16xf32>
    %122 = arith.addf %121, %40 : vector<16x16xf32>
    %cst_41 = arith.constant -3.40282347E+38 : f32
    %123 = vector.broadcast %cst_41 : f32 to vector<16x16xf32>
    %124 = arith.maximumf %122, %123 : vector<16x16xf32>
    %cst_42 = arith.constant dense<0xFF800000> : vector<16xf32>
    %125 = vector.multi_reduction <maximumf>, %124, %cst_42 [1] : vector<16x16xf32> to vector<16xf32>
    %126 = vector.shape_cast %125 : vector<16xf32> to vector<16x1xf32>
    %127 = vector.broadcast %126 : vector<16x1xf32> to vector<16x16xf32>
    %128 = arith.subf %124, %127 : vector<16x16xf32>
    %129 = math.exp %128 : vector<16x16xf32>
    %cst_43 = arith.constant dense<0.000000e+00> : vector<16xf32>
    %130 = vector.multi_reduction <add>, %129, %cst_43 [1] : vector<16x16xf32> to vector<16xf32>
    %131 = vector.shape_cast %130 : vector<16xf32> to vector<16x1xf32>
    %132 = tpu.reciprocal %131 {approx = true} : vector<16x1xf32> -> vector<16x1xf32>
    %133 = vector.broadcast %132 : vector<16x1xf32> to vector<16x16xf32>
    %134 = arith.mulf %129, %133 : vector<16x16xf32>
    %cst_44 = arith.constant dense<0.000000e+00> : vector<16x8xf32>
    %135 = tpu.matmul %134, %117, %cst_44 {dimension_numbers = #tpu.dot_dimension_numbers<[1], [0], [0], [1], [0, 0, 1, 1], [], []>} : vector<16x16xf32>, vector<16x8xf32>, vector<16x8xf32> -> vector<16x8xf32>
    %136 = vector.extract_strided_slice %41 {offsets = [24, 0], sizes = [8, 32], strides = [1, 1]} : vector<32x32xf32> to vector<8x32xf32>
    %cst_45 = arith.constant dense<0.000000e+00> : vector<16x32xf32>
    %137 = tpu.matmul %135, %136, %cst_45 {dimension_numbers = #tpu.dot_dimension_numbers<[1], [0], [0], [1], [0, 0, 1, 1], [], []>} : vector<16x8xf32>, vector<8x32xf32>, vector<16x32xf32> -> vector<16x32xf32>
    %138 = arith.addf %114, %137 : vector<16x32xf32>
    %139 = arith.addf %0, %138 : vector<16x32xf32>
    %c0_46 = arith.constant 0 : index
    %c0_47 = arith.constant 0 : index
    %140 = vector.load %arg5[%c0_46, %c0_47] : memref<1x32xf32, #tpu.memory_space<vmem>>, vector<1x32xf32>
    %141 = arith.mulf %139, %139 : vector<16x32xf32>
    %cst_48 = arith.constant dense<0.000000e+00> : vector<16xf32>
    %142 = vector.multi_reduction <add>, %141, %cst_48 [1] : vector<16x32xf32> to vector<16xf32>
    %143 = vector.shape_cast %142 : vector<16xf32> to vector<16x1xf32>
    %cst_49 = arith.constant 3.200000e+01 : f32
    %144 = vector.broadcast %cst_49 : f32 to vector<16x1xf32>
    %145 = arith.divf %143, %144 : vector<16x1xf32>
    %cst_50 = arith.constant 9.99999997E-7 : f32
    %146 = vector.broadcast %cst_50 : f32 to vector<16x1xf32>
    %147 = arith.addf %145, %146 : vector<16x1xf32>
    %148 = math.rsqrt %147 : vector<16x1xf32>
    %149 = vector.broadcast %148 : vector<16x1xf32> to vector<16x32xf32>
    %150 = arith.mulf %139, %149 : vector<16x32xf32>
    %151 = vector.broadcast %140 : vector<1x32xf32> to vector<16x32xf32>
    %152 = arith.mulf %150, %151 : vector<16x32xf32>
    %c0_51 = arith.constant 0 : index
    %c0_52 = arith.constant 0 : index
    %153 = vector.load %arg8[%c0_51, %c0_52] : memref<32x128xf32, #tpu.memory_space<vmem>>, vector<32x128xf32>
    %cst_53 = arith.constant dense<0.000000e+00> : vector<16x128xf32>
    %154 = tpu.matmul %152, %153, %cst_53 {dimension_numbers = #tpu.dot_dimension_numbers<[1], [0], [0], [1], [0, 0, 1, 1], [], []>} : vector<16x32xf32>, vector<32x128xf32>, vector<16x128xf32> -> vector<16x128xf32>
    %155 = vector.extract_strided_slice %154 {offsets = [0, 0], sizes = [16, 64], strides = [1, 1]} : vector<16x128xf32> to vector<16x64xf32>
    %156 = vector.extract_strided_slice %154 {offsets = [0, 64], sizes = [16, 64], strides = [1, 1]} : vector<16x128xf32> to vector<16x64xf32>
    %157 = arith.negf %155 : vector<16x64xf32>
    %158 = math.exp %157 : vector<16x64xf32>
    %cst_54 = arith.constant 1.000000e+00 : f32
    %159 = vector.broadcast %cst_54 : f32 to vector<16x64xf32>
    %160 = arith.addf %159, %158 : vector<16x64xf32>
    %161 = arith.divf %159, %160 : vector<16x64xf32>
    %162 = arith.mulf %155, %161 : vector<16x64xf32>
    %163 = arith.mulf %162, %156 : vector<16x64xf32>
    %c0_55 = arith.constant 0 : index
    %c0_56 = arith.constant 0 : index
    %164 = vector.load %arg9[%c0_55, %c0_56] : memref<64x32xf32, #tpu.memory_space<vmem>>, vector<64x32xf32>
    %cst_57 = arith.constant dense<0.000000e+00> : vector<16x32xf32>
    %165 = tpu.matmul %163, %164, %cst_57 {dimension_numbers = #tpu.dot_dimension_numbers<[1], [0], [0], [1], [0, 0, 1, 1], [], []>} : vector<16x64xf32>, vector<64x32xf32>, vector<16x32xf32> -> vector<16x32xf32>
    %166 = arith.addf %139, %165 : vector<16x32xf32>
    %c0_58 = arith.constant 0 : index
    %c0_59 = arith.constant 0 : index
    %167 = vector.load %arg10[%c0_58, %c0_59] : memref<16x32xf32, #tpu.memory_space<vmem>>, vector<16x32xf32>
    tpu.vector_store %arg10[%c0_58, %c0_59], %166 {strides = array<i32>} : memref<16x32xf32, #tpu.memory_space<vmem>>, vector<16x32xf32>,
    return
  }
  func.func @transform_0(%arg0: i32) -> (i32, i32) {
    %c0_i32 = arith.constant 0 : i32
    %c0_i32_0 = arith.constant 0 : i32
    %c0_i32_1 = arith.constant 0 : i32
    return %c0_i32, %c0_i32_0 : i32, i32
  }
  func.func @transform_1(%arg0: i32) -> (i32, i32) {
    %c0_i32 = arith.constant 0 : i32
    %c0_i32_0 = arith.constant 0 : i32
    %c0_i32_1 = arith.constant 0 : i32
    return %c0_i32, %c0_i32_0 : i32, i32
  }
  func.func @transform_2(%arg0: i32) -> (i32, i32) {
    %c0_i32 = arith.constant 0 : i32
    %c0_i32_0 = arith.constant 0 : i32
    %c0_i32_1 = arith.constant 0 : i32
    return %c0_i32, %c0_i32_0 : i32, i32
  }
  func.func @transform_3(%arg0: i32) -> (i32, i32) {
    %c0_i32 = arith.constant 0 : i32
    %c0_i32_0 = arith.constant 0 : i32
    %c0_i32_1 = arith.constant 0 : i32
    return %c0_i32, %c0_i32_0 : i32, i32
  }
  func.func @transform_4(%arg0: i32) -> (i32, i32) {
    %c0_i32 = arith.constant 0 : i32
    %c0_i32_0 = arith.constant 0 : i32
    %c0_i32_1 = arith.constant 0 : i32
    return %c0_i32, %c0_i32_0 : i32, i32
  }
  func.func @transform_5(%arg0: i32) -> (i32, i32) {
    %c0_i32 = arith.constant 0 : i32
    %c0_i32_0 = arith.constant 0 : i32
    %c0_i32_1 = arith.constant 0 : i32
    return %c0_i32, %c0_i32_0 : i32, i32
  }
  func.func @transform_6(%arg0: i32) -> (i32, i32) {
    %c0_i32 = arith.constant 0 : i32
    %c0_i32_0 = arith.constant 0 : i32
    %c0_i32_1 = arith.constant 0 : i32
    return %c0_i32, %c0_i32_0 : i32, i32
  }
  func.func @transform_7(%arg0: i32) -> (i32, i32) {
    %c0_i32 = arith.constant 0 : i32
    %c0_i32_0 = arith.constant 0 : i32
    %c0_i32_1 = arith.constant 0 : i32
    return %c0_i32, %c0_i32_0 : i32, i32
  }
  func.func @transform_8(%arg0: i32) -> (i32, i32) {
    %c0_i32 = arith.constant 0 : i32
    %c0_i32_0 = arith.constant 0 : i32
    %c0_i32_1 = arith.constant 0 : i32
    return %c0_i32, %c0_i32_0 : i32, i32
  }
  func.func @transform_9(%arg0: i32) -> (i32, i32) {
    %c0_i32 = arith.constant 0 : i32
    %c0_i32_0 = arith.constant 0 : i32
    %c0_i32_1 = arith.constant 0 : i32
    return %c0_i32, %c0_i32_0 : i32, i32
  }
}

</mosaic_0001>

<bundles_post_ra>
// kernel: tpu_custom_call.1
= control target key start
LH: loop header
LB: loop body
LE: loop exit
PB: predicated region body
PF: predicated region fallthrough
CT: control target
= control target key end

     0   :  { %14 = vsyncpa [#allocation3], 0  ;;  %s1586_s0 = inlined_call_operand.hbm [shape: f32[16,32], index: 0, kind: input, shape index: {}]   ;;  %s1587_s1 = inlined_call_operand.hbm [shape: f32[16,32], index: 1, kind: input, shape index: {}]   ;;  %s1588_s2 = inlined_call_operand.hbm [shape: f32[16,32], index: 2, kind: input, shape index: {}]   ;;  %s1589_s3 = inlined_call_operand.vmem [shape: f32[1,32], index: 3, kind: input, shape index: {}]   ;;  %s1590_s4 = inlined_call_operand.vmem [shape: f32[1,32], index: 4, kind: input, shape index: {}]   ;;  %s1591_s5 = inlined_call_operand.vmem [shape: f32[32,160], index: 5, kind: input, shape index: {}]   ;;  %s1592_s6 = inlined_call_operand.vmem [shape: f32[32,32], index: 6, kind: input, shape index: {}]   ;;  %s1593_s7 = inlined_call_operand.hbm [shape: f32[32,128], index: 7, kind: input, shape index: {}]   ;;  %s1594_s8 = inlined_call_operand.vmem [shape: f32[64,32], index: 8, kind: input, shape index: {}]   ;;  %s1595_s9 = inlined_call_operand.hbm [shape: f32[16,32], index: 9, kind: output, shape index: {}]  }
   0x1   :  { %15 = vsyncpa [#allocation6], 0 }
   0x2   :  { %16 = vsyncpa [#allocation9], 0 }
   0x3   :  { %17 = vsyncpa [#allocation4], 0  ;;  %s35_s11 = sshll.u32 %s1587_s1, 4  ;;  %s1249_s12 = smov [#allocation5]   ;;  %s36_s11 = int_to_ptr.hbm [resolvable:$true] %s35_s11 }
   0x4   :  { %s37_s13 = sshll.u32 %s1249_s12, 4  ;;  %s22_s16 = sshll.u32 %s1586_s0, 4  ;;  %s38_s13 = int_to_ptr.vmem [resolvable:$true] %s37_s13  ;;  %s23_s16 = int_to_ptr.hbm [resolvable:$true] %s22_s16 }
   0x5   :  { %s1250_s17 = smov 128   ;;  %s1251_s18 = smov 8  }
   0x6   :  { %43 = dma.hbm_to_vmem [thread:$0]  %s36_s11, 256, %s38_s13, [#allocation6], %s1250_s17, %s1250_s17, %s1251_s18  }
   0x7   :  { %s1252_s19 = smov [#allocation2]   ;;  %s48_s1 = sshll.u32 %s1588_s2, 4  ;;  %s49_s1 = int_to_ptr.hbm [resolvable:$true] %s48_s1 }
   0x8   :  { %s24_s20 = sshll.u32 %s1252_s19, 4  ;;  %s69_s24 = sshll.u32 %s1593_s7, 4  ;;  %s25_s20 = int_to_ptr.vmem [resolvable:$true] %s24_s20  ;;  %s70_s24 = int_to_ptr.hbm [resolvable:$true] %s69_s24 }
   0x9   :  { %30 = dma.hbm_to_vmem [thread:$0]  %s23_s16, 256, %s25_s20, [#allocation3], %s1250_s17, %s1250_s17, %s1251_s18  }
   0xa   :  { %s1253_s25 = smov [#allocation7]   ;;  %s1254_s27 = smov [#allocation8]  }
   0xb   :  { %s50_s26 = sshll.u32 %s1253_s25, 4  ;;  %s71_s2 = sshll.u32 %s1254_s27, 4  ;;  %s51_s26 = int_to_ptr.vmem [resolvable:$true] %s50_s26  ;;  %s72_s2 = int_to_ptr.vmem [resolvable:$true] %s71_s2 }
   0xc   :  { %56 = dma.hbm_to_vmem [thread:$0]  %s49_s1, 256, %s51_s26, [#allocation6], %s1250_s17, %s1250_s17, %s1251_s18  }
   0xd   :  { %77 = dma.hbm_to_vmem [thread:$0]  %s70_s24, 512, %s72_s2, [#allocation9], %s1250_s17, %s1250_s17, %s1251_s18  }
   0xe   :  { %1241 = dma.done.wait [#allocation3], 256  }
   0xf   :  { %1242 = vsyncadd [#allocation3], 4294967040 }
  0x10   :  { %1243 = dma.done.wait [#allocation6], 512  }
  0x11   :  { %1244 = vsyncadd [#allocation6], 4294966784 }
  0x12   :  { %1245 = dma.done.wait [#allocation9], 512  }
  0x13   :  { %1246 = vsyncadd [#allocation9], 4294966784  ;;  %v1341_v0 = vld [vmem:[#allocation2] sm:$0xff]  ;;  %vm105_vm0 = vcmask 261120   ;;  %v1345_v2 = vld [vmem:[#allocation2 + $0x8] sm:$0xff]  ;;  %v1255_v6 = vmov 32.0  }
  0x14   :  { %v103_v1 = vmul.f32 %v1341_v0, %v1341_v0  ;;  %v104_v4 = vmul.f32 %v1345_v2, %v1345_v2  ;;  %1071 = vrcp.f32 %v1255_v6  ;;  %v156_v10 = vld [vmem:[%s1591_s5 + $0x30] sm:$0xff]  ;;  %v157_v11 = vld [vmem:[%s1591_s5 + $0x38] sm:$0xff]  ;;  %v154_v12 = vld [vmem:[%s1591_s5 + $0x20] sm:$0xff]  ;;  %s1256_s0 = smov 96   ;;  %vm286_vm8 = vcmask 64512   ;;  %s1260_s25 = smov 56  }
  0x15   :  { %176 = vmatpush.msra.mxu0 %v156_v10  ;;  %199 = vmatpush.msra.mxu1 %v157_v11  ;;  %v155_v13 = vld [vmem:[%s1591_s5 + $0x28] sm:$0xff]  ;;  %v152_v15 = vld [vmem:[%s1591_s5 + $0x10] sm:$0xff]  ;;  %v153_v16 = vld [vmem:[%s1591_s5 + $0x18] sm:$0xff]  ;;  %vm326_vm14 = vcmask 130048   ;;  %s1261_s26 = smov 120   ;;  %s1262_s27 = smov 104  }
  0x16   :  { %v106_v3 = vsel %vm105_vm0, %v103_v1, 0.0  ;;  %v109_v5 = vsel %vm105_vm0, %v104_v4, 0.0  ;;  %v150_v17 = vld [vmem:[%s1591_s5] sm:$0xff]  ;;  %v151_v18 = vld [vmem:[%s1591_s5 + $0x8] sm:$0xff]  ;;  %v1379_v26 = vld [vmem:[#allocation5] sm:$0xff]  ;;  %s1257_s5 = smov 64  }
  0x17   :  { %107 = vadd.xlane.f32.xlu0 %v106_v3  ;;  %177 = vmatpush.msra.mxu0 %v154_v12  ;;  %v101_v20 = vld [vmem:[#allocation7 + $0x8] sm:$0xff]  ;;  %v100_v25 = vld [vmem:[#allocation7] sm:$0xff]  ;;  %v1381_v27 = vld [vmem:[#allocation5 + $0x8] sm:$0xff]  ;;  %s1263_s2 = smov 40   ;;  %s1264_s7 = smov 48  }
  0x18   :  { %200 = vmatpush.msra.mxu1 %v155_v13  ;;  %244 = vrot.lane.b32.xlu1 %v101_v20, %s1256_s0  ;;  %v1069_v39 = vld [vmem:[%s1589_s3] ss:$0 sm:$0xff]  ;;  %s1258_s3 = smov 32   ;;  %s1265_s28 = smov 112  }
  0x19   :  { %178 = vmatpush.msra.mxu0 %v152_v15  ;;  %236 = vrot.lane.b32.xlu2 %v1381_v27, %s1257_s5  ;;  %s979_s10 = sshll.u32 %s1595_s9, 4  ;;  %s980_s10 = int_to_ptr.hbm [resolvable:$true] %s979_s10 }
  0x1a   :  { %v1072_v7 = vpop.eup %1071  ;;  %201 = vmatpush.msra.mxu1 %v153_v16  ;;  %v260_v16 = vlaneseq }
  0x1b   :  { %v113_v8 = vmul.f32 32.0, %v1072_v7  ;;  %179 = vmatpush.msra.mxu0 %v150_v17  ;;  %vm117_vm1 = vweird.f32 %v1072_v7 }
  0x1c   :  { %202 = vmatpush.msra.mxu1 %v151_v18  ;;  %v261_v17 = vshrl.u32 %v260_v16, 7  ;;  %v264_v18 = vand.u32 127, %v260_v16 }
  0x1d   :  { %v114_v9 = vsub.f32 1.0, %v113_v8 }
  0x1e   :  { %vm270_vm10 = vcmp.le.s32.totalorder %v264_v18, %v261_v17 }
  0x1f   :  { %110 = vadd.xlane.f32.xlu0 %v109_v5  ;;  %v115_v14 = vmul.f32 %v1072_v7, %v114_v9 }
  0x20   :  { %242 = vrot.lane.b32.xlu1 %v100_v25, %s1256_s0 }
  0x21   :  { %v116_v19 = vadd.f32 %v1072_v7, %v115_v14 }
  0x23   :  { %v1376_v21 = vsel %vm117_vm1, %v1072_v7, %v116_v19  ;;  %v265_v19 = vshra.s32 %v261_v17, 3 }
  0x33   :  { %234 = vrot.lane.b32.xlu0 %v1379_v26, %s1257_s5 }
  0x73   :  { %v237_v58 = vpop.permute.xlu2 %236 }
  0x8a   :  { %v108_v22 = vpop.xlane.xlu0 %107  ;;  %v245_v50 = vpop.permute.xlu1 %244 }
  0x8b   :  { %v119_v23 = vmul.f32 %v1376_v21, %v108_v22  ;;  %v262_v22 = vadd.s32 8, %v261_v17 }
  0x8d   :  { %v121_v24 = vadd.f32 1e-06, %v119_v23  ;;  %v266_v23 = vshra.s32 %v262_v22, 3  ;;  %vm271_vm13 = vcmp.le.s32.totalorder %v264_v18, %v262_v22 }
  0x8f   :  { %1073 = vrsqrt.f32 %v121_v24  ;;  %vm129_vm3 = vweird.f32 %v121_v24 }
  0x92   :  { %v111_v28 = vpop.xlane.xlu0 %110  ;;  %v243_v51 = vpop.permute.xlu1 %242 }
  0x93   :  { %v120_v29 = vmul.f32 %v1376_v21, %v111_v28 }
  0x95   :  { %v1074_v30 = vpop.eup %1073  ;;  %v122_v31 = vadd.f32 1e-06, %v120_v29 }
  0x96   :  { %v124_v32 = vmul.f32 %v1074_v30, %v121_v24  ;;  %vm130_vm2 = vweird.f32 %v1074_v30  ;;  %v1259_v24 = vmov -1e+09  }
  0x97   :  { %1075 = vrsqrt.f32 %v122_v31  ;;  %vm131_vm4 = vmor %vm129_vm3, %vm130_vm2  ;;  %vm139_vm5 = vweird.f32 %v122_v31 }
  0x98   :  { %v125_v33 = vmul.f32 %v1074_v30, %v124_v32 }
  0x9a   :  { %v126_v34 = vmul.f32 0.5, %v125_v33 }
  0x9c   :  { %v127_v35 = vsub.f32 1.5, %v126_v34 }
  0x9d   :  { %v1076_v36 = vpop.eup %1075 }
  0x9e   :  { %v128_v37 = vmul.f32 %v1074_v30, %v127_v35  ;;  %v134_v38 = vmul.f32 %v1076_v36, %v122_v31  ;;  %vm140_vm6 = vweird.f32 %v1076_v36 }
  0x9f   :  { %vm141_vm7 = vmor %vm139_vm5, %vm140_vm6 }
  0xa0   :  { %v135_v40 = vmul.f32 %v1076_v36, %v134_v38  ;;  %v132_v41 = vsel %vm131_vm4, %v1074_v30, %v128_v37 }
  0xa1   :  { %v143_v42 = vmul.f32 %v132_v41, %v1341_v0 }
  0xa2   :  { %v136_v43 = vmul.f32 0.5, %v135_v40 }
  0xa3   :  { %v148_v44 = vmul.f32 %v1069_v39, %v143_v42 }
  0xa4   :  { %v137_v45 = vsub.f32 1.5, %v136_v43 }
  0xa5   :  { %994 = vmatmul.msk.f32.vlgmr.msra.gmra.mxu0 %vm105_vm0, %v148_v44  ;;  %996 = vmatmul.msk.f32.vlgmr.msra.gmra.mxu1 %vm105_vm0, %v148_v44  ;;  %v235_v1 = vpop.permute.xlu0 %234 }
  0xa6   :  { %v138_v46 = vmul.f32 %v1076_v36, %v137_v45 }
  0xa8   :  { %v142_v47 = vsel %vm141_vm7, %v1076_v36, %v138_v46 }
  0xa9   :  { %v144_v48 = vmul.f32 %v142_v47, %v1345_v2 }
  0xab   :  { %v149_v49 = vmul.f32 %v1069_v39, %v144_v48  ;;  %v276_v48 = vld [vmem:[%s1592_s6] sm:$0xff] }
  0xad   :  { %995 = vmatmul.msk.f32.gmra.mxu0 %vm105_vm0, %v149_v49  ;;  %997 = vmatmul.msk.f32.gmra.mxu1 %vm105_vm0, %v149_v49 }
 0x122   :  { %v181_v52 = vpop.f32.mrf.mxu0  ;;  %v1398_v53 = vpop.f32.mrf.mxu1 }
 0x123   :  { %v248_v54 = vmul.f32 %v243_v51, %v181_v52  ;;  %v240_v3 = vmul.f32 %v235_v1, %v181_v52  ;;  %v210_v10 = vmul.f32 %v181_v52, %v1379_v26 }
 0x125   :  { %252 = vrot.lane.b32.xlu1 %v248_v54, %s1256_s0 }
 0x12a   :  { %v184_v55 = vpop.f32.mrf.mxu0  ;;  %v1401_v56 = vpop.f32.mrf.mxu1 }
 0x12b   :  { %369 = vmatpush.msra.mxu3 %v1401_v56  ;;  %v249_v57 = vmul.f32 %v245_v50, %v184_v55  ;;  %v241_v59 = vmul.f32 %v237_v58, %v184_v55  ;;  %v211_v13 = vmul.f32 %v184_v55, %v1381_v27 }
 0x12d   :  { %216 = vrot.lane.b32.xlu1 %v101_v20, %s1258_s3  ;;  %370 = vmatpush.msra.mxu3 %v1398_v53  ;;  %v267_v20 = vshra.s32 %v264_v18, 3 }
 0x12e   :  { %254 = vrot.lane.b32.xlu2 %v249_v57, %s1256_s0 }
 0x12f   :  { %vm268_vm9 = vcmp.eq.s32.totalorder %v265_v19, %v267_v20  ;;  %vm269_vm12 = vcmp.eq.s32.totalorder %v266_v23, %v267_v20 }
 0x130   :  { %vm272_vm11 = vmand %vm268_vm9, %vm270_vm10 }
 0x131   :  { %vm273_vm15 = vmand %vm269_vm12, %vm271_vm13 }
 0x132   :  { %v1432_v31 = vsel %vm273_vm15, 0.0, %v1259_v24 }
 0x136   :  { %214 = vrot.lane.b32.xlu2 %v100_v25, %s1258_s3  ;;  %v1428_v25 = vsel %vm272_vm11, 0.0, %v1259_v24 }
 0x188   :  { %v255_v60 = vpop.permute.xlu2 %254 }
 0x189   :  { %v1406_v61 = vadd.f32 %v255_v60, %v241_v59 }
 0x18b   :  { %284 = vrot.lane.b32.xlu2 %v1406_v61, %s1257_s5 }
 0x190   :  { %v215_v62 = vpop.permute.xlu2 %214 }
 0x191   :  { %v220_v63 = vmul.f32 %v215_v62, %v181_v52 }
 0x193   :  { %224 = vrot.lane.b32.xlu2 %v220_v63, %s1256_s0 }
 0x197   :  { %v253_v4 = vpop.permute.xlu1 %252 }
 0x198   :  { %v1411_v5 = vadd.f32 %v253_v4, %v240_v3 }
 0x19a   :  { %282 = vrot.lane.b32.xlu1 %v1411_v5, %s1257_s5 }
 0x19f   :  { %v217_v6 = vpop.permute.xlu1 %216 }
 0x1a0   :  { %v221_v7 = vmul.f32 %v217_v6, %v184_v55 }
 0x1a2   :  { %226 = vrot.lane.b32.xlu0 %v221_v7, %s1256_s0 }
 0x1e5   :  { %v285_v8 = vpop.permute.xlu2 %284 }
 0x1e6   :  { %998 = vmatpush.xpose.msk.msra.mxu2 %vm286_vm8, %v285_v8 }
 0x1ed   :  { %v225_v9 = vpop.permute.xlu2 %224 }
 0x1ee   :  { %v1419_v12 = vadd.f32 %v225_v9, %v210_v10 }
 0x20c   :  { %v283_v11 = vpop.permute.xlu1 %282 }
 0x20d   :  { %999 = vmatpush.xpose.msk.msra.mxu2 %vm286_vm8, %v283_v11 }
 0x210   :  { %1000 = vmatmul.msk.f32.vlgmr.msra.gmra.mxu2 %vm286_vm8, %v1419_v12 }
 0x211   :  { %532 = vmatpush.msrb.mxu2 %v276_v48 }
 0x214   :  { %v227_v14 = vpop.permute.xlu0 %226 }
 0x215   :  { %v1424_v15 = vadd.f32 %v227_v14, %v211_v13 }
 0x218   :  { %1001 = vmatmul.msk.f32.gmra.mxu2 %vm286_vm8, %v1424_v15 }
 0x293   :  { %v314_v26 = vpop.f32.mrf.mxu2 }
 0x294   :  { %v320_v27 = vmul.f32 0.35355338, %v314_v26 }
 0x296   :  { %v322_v28 = vadd.f32 %v320_v27, %v1428_v25 }
 0x298   :  { %v324_v29 = vmax.f32 %v322_v28, -3.4028235e+38 }
 0x29a   :  { %v327_v30 = vsel %vm326_vm14, %v324_v29, -inf }
 0x29b   :  { %328 = vmax.xlane.f32.xlu1 %v327_v30  ;;  %v317_v32 = vpop.f32.mrf.mxu2 }
 0x29c   :  { %v321_v33 = vmul.f32 0.35355338, %v317_v32 }
 0x29e   :  { %v323_v34 = vadd.f32 %v321_v33, %v1432_v31 }
 0x2a0   :  { %v325_v35 = vmax.f32 %v323_v34, -3.4028235e+38 }
 0x2a2   :  { %v330_v36 = vsel %vm326_vm14, %v325_v35, -inf }
 0x2a3   :  { %331 = vmax.xlane.f32.xlu2 %v330_v36 }
 0x2b4   :  { %384 = vrot.lane.b32.xlu1 %v1406_v61, %s1260_s25 }
 0x2bc   :  { %380 = vrot.lane.b32.xlu1 %v1424_v15, %s1261_s26 }
 0x2c4   :  { %673 = vrot.lane.b32.xlu1 %v1419_v12, %s1262_s27 }
 0x2cc   :  { %675 = vrot.lane.b32.xlu1 %v1424_v15, %s1262_s27 }
 0x30e   :  { %v329_v37 = vpop.xlane.xlu1 %328 }
 0x30f   :  { %v333_v38 = vsub.f32 %v324_v29, %v329_v37 }
 0x311   :  { %v335_v39 = vmul.f32 1.442695, %v333_v38 }
 0x313   :  { %1077 = vpow2.f32 %v335_v39 }
 0x316   :  { %v332_v40 = vpop.xlane.xlu2 %331 }
 0x317   :  { %v334_v41 = vsub.f32 %v325_v35, %v332_v40 }
 0x319   :  { %v1078_v42 = vpop.eup %1077  ;;  %v337_v43 = vmul.f32 1.442695, %v334_v41 }
 0x31a   :  { %v339_v44 = vsel %vm326_vm14, %v1078_v42, 0.0 }
 0x31b   :  { %1079 = vpow2.f32 %v337_v43  ;;  %340 = vadd.xlane.f32.xlu0 %v339_v44 }
 0x321   :  { %v1080_v45 = vpop.eup %1079 }
 0x322   :  { %v342_v46 = vsel %vm326_vm14, %v1080_v45, 0.0 }
 0x323   :  { %343 = vadd.xlane.f32.xlu2 %v342_v46 }
 0x326   :  { %v385_v47 = vpop.permute.xlu1 %384 }
 0x327   :  { %1004 = vmatpush.xpose.msk.msrb.mxu3 %vm286_vm8, %v385_v47 }
 0x32e   :  { %v381_v62 = vpop.permute.xlu1 %380 }
 0x32f   :  { %382 = vrot.lane.b32.xlu0 %v1411_v5, %s1260_s25 }
 0x336   :  { %v674_v6 = vpop.permute.xlu1 %673 }
 0x337   :  { %679 = vrot.lane.b32.xlu0 %v1406_v61, %s1263_s2 }
 0x33b   :  { %378 = vrot.lane.b32.xlu2 %v1419_v12, %s1261_s26 }
 0x33f   :  { %677 = vrot.lane.b32.xlu0 %v1411_v5, %s1263_s2 }
 0x343   :  { %546 = vrot.lane.b32.xlu2 %v1406_v61, %s1264_s7 }
 0x347   :  { %540 = vrot.lane.b32.xlu0 %v1419_v12, %s1265_s28  ;;  %v676_v12 = vpop.permute.xlu1 %675 }
 0x34b   :  { %544 = vrot.lane.b32.xlu2 %v1411_v5, %s1264_s7 }
 0x353   :  { %542 = vrot.lane.b32.xlu2 %v1424_v15, %s1265_s28 }
 0x38e   :  { %v341_v49 = vpop.xlane.xlu0 %340 }
 0x38f   :  { %1081 = vrcp.f32 %v341_v49 }
 0x395   :  { %v1082_v50 = vpop.eup %1081 }
 0x396   :  { %v344_v51 = vpop.xlane.xlu2 %343  ;;  %v347_v52 = vmul.f32 %v1082_v50, %v1078_v42 }
 0x397   :  { %1083 = vrcp.f32 %v344_v51 }
 0x398   :  { %1002 = vmatmul.msk.f32.vlgmr.msra.gmra.mxu3 %vm326_vm14, %v347_v52 }
 0x39d   :  { %v1084_v54 = vpop.eup %1083 }
 0x39e   :  { %v379_v55 = vpop.permute.xlu2 %378  ;;  %v348_v57 = vmul.f32 %v1084_v54, %v1080_v45 }
 0x3a0   :  { %1003 = vmatmul.msk.f32.gmra.mxu3 %vm326_vm14, %v348_v57 }
 0x3a1   :  { %v383_v58 = vpop.permute.xlu0 %382 }
 0x3a2   :  { %1005 = vmatpush.xpose.msk.msrb.mxu3 %vm286_vm8, %v383_v58  ;;  %v1054_v58 = vpack.i.bf16 %v1398_v53, %v1401_v56 }
 0x3a6   :  { %v547_v59 = vpop.permute.xlu2 %546 }
 0x3a7   :  { %1014 = vmatpush.xpose.msk.msra.mxu3 %vm286_vm8, %v547_v59 }
 0x3a8   :  { %1006 = vmatmul.msk.f32.vlgmr.msrb.gmra.mxu3 %vm286_vm8, %v379_v55 }
 0x3a9   :  { %v680_v60 = vpop.permute.xlu0 %679 }
 0x3aa   :  { %1022 = vmatpush.xpose.msk.msra.mxu2 %vm286_vm8, %v680_v60 }
 0x3ae   :  { %v545_v61 = vpop.permute.xlu2 %544 }
 0x3af   :  { %1015 = vmatpush.xpose.msk.msra.mxu3 %vm286_vm8, %v545_v61 }
 0x3b0   :  { %1007 = vmatmul.msk.f32.gmra.mxu3 %vm286_vm8, %v381_v62 }
 0x3b1   :  { %v678_v63 = vpop.permute.xlu0 %677 }
 0x3b2   :  { %1023 = vmatpush.xpose.msk.msra.mxu2 %vm286_vm8, %v678_v63 }
 0x3b6   :  { %v543_v3 = vpop.permute.xlu2 %542 }
 0x3b9   :  { %v541_v1 = vpop.permute.xlu0 %540 }
 0x3ba   :  { %1016 = vmatmul.msk.f32.vlgmr.msra.gmra.mxu3 %vm286_vm8, %v541_v1 }
 0x3c2   :  { %1017 = vmatmul.msk.f32.gmra.mxu3 %vm286_vm8, %v543_v3 }
 0x41b   :  { %v372_v4 = vpop.f32.mrf.mxu3 }
 0x41c   :  { %1012 = vmatmul.msk.f32.vlgmr.msrb.gmra.mxu2 %vm286_vm8, %v372_v4 }
 0x423   :  { %v375_v5 = vpop.f32.mrf.mxu3 }
 0x424   :  { %1013 = vmatmul.msk.f32.gmra.mxu2 %vm286_vm8, %v375_v5 }
 0x42b   :  { %v411_v7 = vpop.f32.mrf.mxu3 }
 0x42c   :  { %v417_v8 = vmul.f32 0.35355338, %v411_v7  ;;  %1024 = vmatmul.msk.f32.vlgmr.msra.gmra.mxu2 %vm286_vm8, %v674_v6 }
 0x42e   :  { %v419_v9 = vadd.f32 %v417_v8, %v1428_v25 }
 0x430   :  { %v421_v10 = vmax.f32 %v419_v9, -3.4028235e+38 }
 0x432   :  { %v423_v11 = vsel %vm326_vm14, %v421_v10, -inf }
 0x433   :  { %424 = vmax.xlane.f32.xlu0 %v423_v11  ;;  %v414_v13 = vpop.f32.mrf.mxu3 }
 0x434   :  { %v418_v14 = vmul.f32 0.35355338, %v414_v13  ;;  %1025 = vmatmul.msk.f32.gmra.mxu2 %vm286_vm8, %v676_v12 }
 0x436   :  { %v420_v15 = vadd.f32 %v418_v14, %v1432_v31 }
 0x438   :  { %v422_v16 = vmax.f32 %v420_v15, -3.4028235e+38 }
 0x43a   :  { %v426_v17 = vsel %vm326_vm14, %v422_v16, -inf }
 0x43b   :  { %427 = vmax.xlane.f32.xlu1 %v426_v17 }
 0x43d   :  { %v573_v18 = vpop.f32.mrf.mxu3 }
 0x43e   :  { %v579_v19 = vmul.f32 0.35355338, %v573_v18 }
 0x440   :  { %v581_v20 = vadd.f32 %v579_v19, %v1428_v25 }
 0x442   :  { %v583_v22 = vmax.f32 %v581_v20, -3.4028235e+38 }
 0x444   :  { %v585_v23 = vsel %vm326_vm14, %v583_v22, -inf }
 0x445   :  { %586 = vmax.xlane.f32.xlu0 %v585_v23  ;;  %v576_v30 = vpop.f32.mrf.mxu3 }
 0x446   :  { %v580_v35 = vmul.f32 0.35355338, %v576_v30 }
 0x448   :  { %v582_v41 = vadd.f32 %v580_v35, %v1432_v31  ;;  %v278_v35 = vld [vmem:[%s1592_s6 + $0x10] sm:$0xff] }
 0x44a   :  { %v584_v48 = vmax.f32 %v582_v41, -3.4028235e+38 }
 0x44c   :  { %v588_v51 = vsel %vm326_vm14, %v584_v48, -inf }
 0x49f   :  { %v1481_v24 = vpop.f32.mrf.mxu2 }
 0x4a6   :  { %v425_v26 = vpop.xlane.xlu0 %424 }
 0x4a7   :  { %v429_v27 = vsub.f32 %v421_v10, %v425_v26  ;;  %v1483_v28 = vpop.f32.mrf.mxu2 }
 0x4a9   :  { %v431_v29 = vmul.f32 1.442695, %v429_v27 }
 0x4ab   :  { %1085 = vpow2.f32 %v431_v29  ;;  %v277_v29 = vld [vmem:[%s1592_s6 + $0x8] sm:$0xff] }
 0x4ac   :  { %503 = vmatpush.msrb.mxu1 %v277_v29 }
 0x4ae   :  { %v428_v36 = vpop.xlane.xlu1 %427  ;;  %663 = vmatpush.msra.mxu1 %v278_v35  ;;  %v938_v35 = vld [vmem:[%s1594_s8 + $0x38] sm:$0xff] }
 0x4af   :  { %v706_v32 = vpop.f32.mrf.mxu2  ;;  %v430_v40 = vsub.f32 %v422_v16, %v428_v36  ;;  %954 = vmatpush.msrb.mxu2 %v938_v35 }
 0x4b0   :  { %v712_v33 = vmul.f32 0.35355338, %v706_v32 }
 0x4b1   :  { %v1485_v34 = vpop.eup %1085  ;;  %v433_v45 = vmul.f32 1.442695, %v430_v40 }
 0x4b2   :  { %v714_v37 = vadd.f32 %v712_v33, %v1428_v25  ;;  %v435_v38 = vsel %vm326_vm14, %v1485_v34, 0.0 }
 0x4b3   :  { %436 = vadd.xlane.f32.xlu0 %v435_v38  ;;  %1087 = vpow2.f32 %v433_v45 }
 0x4b4   :  { %v716_v39 = vmax.f32 %v714_v37, -3.4028235e+38 }
 0x4b6   :  { %v718_v42 = vsel %vm326_vm14, %v716_v39, -inf }
 0x4b7   :  { %719 = vmax.xlane.f32.xlu2 %v718_v42  ;;  %v709_v43 = vpop.f32.mrf.mxu2 }
 0x4b8   :  { %v713_v44 = vmul.f32 0.35355338, %v709_v43  ;;  %v587_v47 = vpop.xlane.xlu0 %586 }
 0x4b9   :  { %v591_v25 = vsub.f32 %v583_v22, %v587_v47  ;;  %v1088_v54 = vpop.eup %1087  ;;  %v279_v47 = vld [vmem:[%s1592_s6 + $0x18] sm:$0xff] }
 0x4ba   :  { %v715_v46 = vadd.f32 %v713_v44, %v1432_v31  ;;  %v438_v55 = vsel %vm326_vm14, %v1088_v54, 0.0 }
 0x4bb   :  { %v593_v52 = vmul.f32 1.442695, %v591_v25 }
 0x4bc   :  { %v717_v49 = vmax.f32 %v715_v46, -3.4028235e+38 }
 0x4bd   :  { %1089 = vpow2.f32 %v593_v52 }
 0x4be   :  { %v721_v50 = vsel %vm326_vm14, %v717_v49, -inf }
 0x4bf   :  { %722 = vmax.xlane.f32.xlu1 %v721_v50  ;;  %589 = vmax.xlane.f32.xlu2 %v588_v51 }
 0x4c3   :  { %v1090_v57 = vpop.eup %1089 }
 0x4c4   :  { %v597_v31 = vsel %vm326_vm14, %v1090_v57, 0.0 }
 0x4c7   :  { %439 = vadd.xlane.f32.xlu2 %v438_v55 }
 0x4cf   :  { %598 = vadd.xlane.f32.xlu2 %v597_v31 }
 0x4d8   :  { %1055 = vrot.lane.b32.xlu1 %v1054_v58, %s1261_s26 }
 0x4e0   :  { %1065 = vrot.lane.b32.xlu1 %v1054_v58, %s1265_s28 }
 0x526   :  { %v437_v8 = vpop.xlane.xlu0 %436 }
 0x52a   :  { %v720_v59 = vpop.xlane.xlu2 %719 }
 0x52b   :  { %v724_v60 = vsub.f32 %v716_v39, %v720_v59 }
 0x52d   :  { %v726_v61 = vmul.f32 1.442695, %v724_v60 }
 0x52f   :  { %1091 = vpow2.f32 %v726_v61 }
 0x532   :  { %v723_v62 = vpop.xlane.xlu1 %722  ;;  %v590_v63 = vpop.xlane.xlu2 %589 }
 0x533   :  { %v725_v1 = vsub.f32 %v717_v49, %v723_v62  ;;  %v592_v5 = vsub.f32 %v584_v48, %v590_v63 }
 0x535   :  { %v1092_v3 = vpop.eup %1091  ;;  %v728_v4 = vmul.f32 1.442695, %v725_v1  ;;  %v595_v7 = vmul.f32 1.442695, %v592_v5  ;;  %v851_v5 = vld [vmem:[#allocation8 + $0x18] sm:$0xff] }
 0x536   :  { %v730_v6 = vsel %vm326_vm14, %v1092_v3, 0.0 }
 0x537   :  { %1093 = vpow2.f32 %v728_v4  ;;  %731 = vadd.xlane.f32.xlu0 %v730_v6  ;;  %v849_v6 = vld [vmem:[#allocation8 + $0x8] sm:$0xff] }
 0x538   :  { %1095 = vpow2.f32 %v595_v7  ;;  %v848_v7 = vld [vmem:[#allocation8] sm:$0xff] }
 0x539   :  { %1097 = vrcp.f32 %v437_v8 }
 0x53a   :  { %v440_v11 = vpop.xlane.xlu2 %439 }
 0x53b   :  { %1099 = vrcp.f32 %v440_v11 }
 0x53d   :  { %v1094_v53 = vpop.eup %1093 }
 0x53e   :  { %v733_v56 = vsel %vm326_vm14, %v1094_v53, 0.0  ;;  %v1096_v9 = vpop.eup %1095 }
 0x53f   :  { %734 = vadd.xlane.f32.xlu2 %v733_v56  ;;  %v600_v10 = vsel %vm326_vm14, %v1096_v9, 0.0  ;;  %v1098_v13 = vpop.eup %1097 }
 0x540   :  { %v443_v16 = vmul.f32 %v1098_v13, %v1485_v34 }
 0x541   :  { %v1100_v19 = vpop.eup %1099 }
 0x542   :  { %v599_v17 = vpop.xlane.xlu2 %598  ;;  %v444_v23 = vmul.f32 %v1100_v19, %v1088_v54  ;;  %v1070_v19 = vld [vmem:[%s1590_s4] ss:$0 sm:$0xff] }
 0x543   :  { %1101 = vrcp.f32 %v599_v17 }
 0x547   :  { %601 = vadd.xlane.f32.xlu2 %v600_v10 }
 0x549   :  { %v1102_v26 = vpop.eup %1101 }
 0x54a   :  { %v1056_v12 = vpop.permute.xlu1 %1055  ;;  %v605_v27 = vmul.f32 %v1102_v26, %v1090_v57 }
 0x54b   :  { %1060 = vrot.lane.b32.xlu0 %v1054_v58, %s1262_s27  ;;  %v1057_v14 = vunpack.i.l.bf16 %v1056_v12  ;;  %v1058_v15 = vunpack.i.h.bf16 %v1056_v12 }
 0x54d   :  { %473 = vmatpush.msrb.mxu0 %v1057_v14 }
 0x54f   :  { %474 = vmatpush.msrb.mxu0 %v1058_v15 }
 0x550   :  { %1008 = vmatmul.msk.f32.vlgmr.msrb.gmra.mxu0 %vm326_vm14, %v443_v16 }
 0x552   :  { %v1066_v18 = vpop.permute.xlu1 %1065 }
 0x553   :  { %v1067_v20 = vunpack.i.l.bf16 %v1066_v18  ;;  %v1068_v22 = vunpack.i.h.bf16 %v1066_v18 }
 0x555   :  { %633 = vmatpush.msra.mxu0 %v1067_v20 }
 0x557   :  { %634 = vmatpush.msra.mxu0 %v1068_v22 }
 0x558   :  { %1009 = vmatmul.msk.f32.gmra.mxu0 %vm326_vm14, %v444_v23 }
 0x559   :  { %796 = vmatpush.msrb.mxu0 %v279_v47 }
 0x560   :  { %1018 = vmatmul.msk.f32.vlgmr.msra.gmra.mxu0 %vm326_vm14, %v605_v27 }
 0x5aa   :  { %v732_v32 = vpop.xlane.xlu0 %731 }
 0x5ab   :  { %1103 = vrcp.f32 %v732_v32 }
 0x5b1   :  { %v1104_v36 = vpop.eup %1103 }
 0x5b2   :  { %v735_v30 = vpop.xlane.xlu2 %734  ;;  %v738_v40 = vmul.f32 %v1104_v36, %v1092_v3  ;;  %v937_v36 = vld [vmem:[%s1594_s8 + $0x30] sm:$0xff] }
 0x5b3   :  { %955 = vmatpush.msrb.mxu2 %v937_v36 }
 0x5ba   :  { %v602_v33 = vpop.xlane.xlu2 %601 }
 0x5bb   :  { %1105 = vrcp.f32 %v602_v33 }
 0x5bc   :  { %1107 = vrcp.f32 %v735_v30 }
 0x5bd   :  { %v1061_v34 = vpop.permute.xlu0 %1060 }
 0x5be   :  { %v1062_v37 = vunpack.i.l.bf16 %v1061_v34  ;;  %v1063_v38 = vunpack.i.h.bf16 %v1061_v34 }
 0x5c0   :  { %766 = vmatpush.msrb.mxu3 %v1062_v37  ;;  %v936_v37 = vld [vmem:[%s1594_s8 + $0x28] sm:$0xff] }
 0x5c1   :  { %v1106_v39 = vpop.eup %1105  ;;  %956 = vmatpush.msrb.mxu2 %v936_v37 }
 0x5c2   :  { %767 = vmatpush.msrb.mxu3 %v1063_v38  ;;  %v606_v41 = vmul.f32 %v1106_v39, %v1096_v9  ;;  %v1108_v42 = vpop.eup %1107  ;;  %v935_v39 = vld [vmem:[%s1594_s8 + $0x20] sm:$0xff] }
 0x5c3   :  { %1026 = vmatmul.msk.f32.vlgmr.msrb.gmra.mxu3 %vm326_vm14, %v738_v40  ;;  %v739_v43 = vmul.f32 %v1108_v42, %v1094_v53  ;;  %v934_v40 = vld [vmem:[%s1594_s8 + $0x18] sm:$0xff]  ;;  %957 = vmatpush.msrb.mxu2 %v935_v39  ;;  %v932_v42 = vld [vmem:[%s1594_s8 + $0x8] sm:$0xff] }
 0x5c4   :  { %1019 = vmatmul.msk.f32.gmra.mxu0 %vm326_vm14, %v606_v41  ;;  %v933_v41 = vld [vmem:[%s1594_s8 + $0x10] sm:$0xff] }
 0x5c5   :  { %958 = vmatpush.msrb.mxu2 %v934_v40 }
 0x5c7   :  { %959 = vmatpush.msrb.mxu2 %v933_v41 }
 0x5c9   :  { %960 = vmatpush.msrb.mxu2 %v932_v42 }
 0x5cb   :  { %1027 = vmatmul.msk.f32.gmra.mxu3 %vm326_vm14, %v739_v43  ;;  %vm939_vm14 = vcmask 523264  }
 0x5cd   :  { %v476_v44 = vpop.f32.mrf.mxu0 }
 0x5ce   :  { %1010 = vmatmul.msk.f32.vlgmr.msrb.gmra.mxu1 %vm286_vm8, %v476_v44 }
 0x5cf   :  { %870 = vmatpush.msrb.mxu1 %v851_v5 }
 0x5d5   :  { %v479_v45 = vpop.f32.mrf.mxu0 }
 0x5d6   :  { %1011 = vmatmul.msk.f32.gmra.mxu1 %vm286_vm8, %v479_v45 }
 0x5dd   :  { %v636_v46 = vpop.f32.mrf.mxu0 }
 0x5de   :  { %1020 = vmatmul.msk.f32.vlgmr.msra.gmra.mxu1 %vm286_vm8, %v636_v46 }
 0x641   :  { %v639_v48 = vpop.f32.mrf.mxu0 }
 0x642   :  { %1021 = vmatmul.msk.f32.gmra.mxu1 %vm286_vm8, %v639_v48  ;;  %v931_v48 = vld [vmem:[%s1594_s8] sm:$0xff]  ;;  %s1266_s8 = smov [#allocation10]  }
 0x643   :  { %961 = vmatpush.msrb.mxu2 %v931_v48  ;;  %s977_s28 = sshll.u32 %s1266_s8, 4  ;;  %s978_s28 = int_to_ptr.vmem [resolvable:$true] %s977_s28 }
 0x646   :  { %v769_v49 = vpop.f32.mrf.mxu3 }
 0x647   :  { %1028 = vmatmul.msk.f32.vlgmr.msrb.gmra.mxu0 %vm286_vm8, %v769_v49 }
 0x64b   :  { %v505_v50 = vpop.f32.mrf.mxu1 }
 0x64c   :  { %v535_v54 = vadd.f32 %v1481_v24, %v505_v50 }
 0x64e   :  { %v772_v25 = vpop.f32.mrf.mxu3 }
 0x64f   :  { %1029 = vmatmul.msk.f32.gmra.mxu0 %vm286_vm8, %v772_v25 }
 0x653   :  { %v508_v51 = vpop.f32.mrf.mxu1 }
 0x654   :  { %v538_v60 = vadd.f32 %v1483_v28, %v508_v51  ;;  %v850_v28 = vld [vmem:[#allocation8 + $0x10] sm:$0xff] }
 0x655   :  { %871 = vmatpush.msrb.mxu1 %v850_v28 }
 0x657   :  { %872 = vmatpush.msrb.mxu1 %v849_v6 }
 0x659   :  { %873 = vmatpush.msrb.mxu1 %v848_v7 }
 0x65b   :  { %v665_v52 = vpop.f32.mrf.mxu1 }
 0x65c   :  { %v671_v55 = vadd.f32 %v665_v52, %v535_v54 }
 0x6bf   :  { %v668_v59 = vpop.f32.mrf.mxu1 }
 0x6c0   :  { %v672_v62 = vadd.f32 %v668_v59, %v538_v60 }
 0x6c4   :  { %v798_v57 = vpop.f32.mrf.mxu0 }
 0x6c5   :  { %v804_v31 = vadd.f32 %v798_v57, %v671_v55 }
 0x6c7   :  { %v1529_v58 = vadd.f32 %v804_v31, %v1341_v0 }
 0x6c9   :  { %v809_v61 = vmul.f32 %v1529_v58, %v1529_v58 }
 0x6cb   :  { %v811_v63 = vsel %vm105_vm0, %v809_v61, 0.0 }
 0x6cc   :  { %812 = vadd.xlane.f32.xlu1 %v811_v63  ;;  %v801_v1 = vpop.f32.mrf.mxu0 }
 0x6cd   :  { %v805_v3 = vadd.f32 %v801_v1, %v672_v62 }
 0x6cf   :  { %v1536_v24 = vadd.f32 %v805_v3, %v1345_v2 }
 0x6d1   :  { %v810_v4 = vmul.f32 %v1536_v24, %v1536_v24 }
 0x6d3   :  { %v814_v0 = vsel %vm105_vm0, %v810_v4, 0.0 }
 0x6d4   :  { %815 = vadd.xlane.f32.xlu0 %v814_v0 }
 0x73f   :  { %v813_v53 = vpop.xlane.xlu1 %812 }
 0x740   :  { %v817_v56 = vmul.f32 %v813_v53, %v1376_v21 }
 0x742   :  { %v819_v8 = vadd.f32 1e-06, %v817_v56 }
 0x744   :  { %1109 = vrsqrt.f32 %v819_v8  ;;  %vm827_vm2 = vweird.f32 %v819_v8 }
 0x747   :  { %v816_v2 = vpop.xlane.xlu0 %815 }
 0x748   :  { %v818_v9 = vmul.f32 %v816_v2, %v1376_v21 }
 0x74a   :  { %v1110_v10 = vpop.eup %1109  ;;  %v820_v11 = vadd.f32 1e-06, %v818_v9 }
 0x74b   :  { %v822_v12 = vmul.f32 %v1110_v10, %v819_v8  ;;  %vm828_vm1 = vweird.f32 %v1110_v10 }
 0x74c   :  { %1111 = vrsqrt.f32 %v820_v11  ;;  %vm829_vm3 = vmor %vm827_vm2, %vm828_vm1  ;;  %vm837_vm5 = vweird.f32 %v820_v11 }
 0x74d   :  { %v823_v13 = vmul.f32 %v1110_v10, %v822_v12 }
 0x74f   :  { %v824_v14 = vmul.f32 0.5, %v823_v13 }
 0x751   :  { %v825_v15 = vsub.f32 1.5, %v824_v14 }
 0x752   :  { %v1112_v16 = vpop.eup %1111 }
 0x753   :  { %v826_v17 = vmul.f32 %v1110_v10, %v825_v15  ;;  %v832_v18 = vmul.f32 %v1112_v16, %v820_v11  ;;  %vm838_vm4 = vweird.f32 %v1112_v16 }
 0x754   :  { %vm839_vm6 = vmor %vm837_vm5, %vm838_vm4 }
 0x755   :  { %v830_v20 = vsel %vm829_vm3, %v1110_v10, %v826_v17  ;;  %v833_v22 = vmul.f32 %v1112_v16, %v832_v18 }
 0x756   :  { %v841_v21 = vmul.f32 %v830_v20, %v1529_v58 }
 0x757   :  { %v834_v23 = vmul.f32 0.5, %v833_v22 }
 0x758   :  { %v846_v26 = vmul.f32 %v1070_v19, %v841_v21 }
 0x759   :  { %v835_v27 = vsub.f32 1.5, %v834_v23 }
 0x75a   :  { %1030 = vmatmul.msk.f32.vlgmr.msrb.gmra.mxu1 %vm105_vm0, %v846_v26 }
 0x75b   :  { %v836_v29 = vmul.f32 %v1112_v16, %v835_v27 }
 0x75d   :  { %v840_v30 = vsel %vm839_vm6, %v1112_v16, %v836_v29 }
 0x75e   :  { %v842_v32 = vmul.f32 %v840_v30, %v1536_v24 }
 0x760   :  { %v847_v33 = vmul.f32 %v1070_v19, %v842_v32 }
 0x762   :  { %1031 = vmatmul.msk.f32.gmra.mxu1 %vm105_vm0, %v847_v33 }
 0x7d7   :  { %v875_v34 = vpop.f32.mrf.mxu1 }
 0x7d8   :  { %923 = vrot.lane.b32.xlu2 %v875_v34, %s1257_s5  ;;  %v1032_v43 = vmul.f32 -1.442695, %v875_v34 }
 0x7da   :  { %1113 = vpow2.f32 %v1032_v43 }
 0x7df   :  { %v878_v38 = vpop.f32.mrf.mxu1 }
 0x7e0   :  { %925 = vrot.lane.b32.xlu2 %v878_v38, %s1257_s5  ;;  %v1033_v44 = vmul.f32 -1.442695, %v878_v38  ;;  %v1114_v45 = vpop.eup %1113 }
 0x7e1   :  { %v887_v46 = vadd.f32 1.0, %v1114_v45 }
 0x7e2   :  { %1115 = vpow2.f32 %v1033_v44 }
 0x7e3   :  { %1117 = vrcp.f32 %v887_v46  ;;  %v900_v59 = vand.u32 2147483648, %v887_v46  ;;  %vm894_vm8 = vweird.f32 %v887_v46  ;;  %v898_v60 = vand.u32 2147483647, %v887_v46 }
 0x7e5   :  { %v901_v63 = vor.u32 1.1754944e-38, %v900_v59  ;;  %vm899_vm10 = vcmp.eq.f32.partialorder %v898_v60, 8.507059e+37 }
 0x7e8   :  { %v1116_v47 = vpop.eup %1115 }
 0x7e9   :  { %v888_v49 = vadd.f32 1.0, %v1116_v47  ;;  %v1118_v25 = vpop.eup %1117 }
 0x7ea   :  { %v890_v50 = vmul.f32 %v1118_v25, %v887_v46  ;;  %vm895_vm7 = vweird.f32 %v1118_v25 }
 0x7eb   :  { %1119 = vrcp.f32 %v888_v49  ;;  %vm896_vm9 = vmor %vm894_vm8, %vm895_vm7  ;;  %v915_v4 = vand.u32 2147483648, %v888_v49  ;;  %vm909_vm12 = vweird.f32 %v888_v49  ;;  %v913_v0 = vand.u32 2147483647, %v888_v49 }
 0x7ec   :  { %v891_v51 = vsub.f32 1.0, %v890_v50 }
 0x7ed   :  { %v916_v53 = vor.u32 1.1754944e-38, %v915_v4  ;;  %vm914_vm15 = vcmp.eq.f32.partialorder %v913_v0, 8.507059e+37 }
 0x7ee   :  { %v892_v55 = vmul.f32 %v1118_v25, %v891_v51 }
 0x7f0   :  { %v893_v31 = vadd.f32 %v1118_v25, %v892_v55 }
 0x7f1   :  { %v1120_v52 = vpop.eup %1119 }
 0x7f2   :  { %v905_v54 = vmul.f32 %v1120_v52, %v888_v49  ;;  %v897_v62 = vsel %vm896_vm9, %v1118_v25, %v893_v31  ;;  %vm910_vm11 = vweird.f32 %v1120_v52 }
 0x7f3   :  { %v902_v1 = vsel %vm899_vm10, %v901_v63, %v897_v62  ;;  %vm911_vm13 = vmor %vm909_vm12, %vm910_vm11 }
 0x7f4   :  { %v906_v57 = vsub.f32 1.0, %v905_v54  ;;  %v919_v5 = vmul.f32 %v902_v1, %v875_v34 }
 0x7f6   :  { %v907_v61 = vmul.f32 %v1120_v52, %v906_v57 }
 0x7f8   :  { %v908_v3 = vadd.f32 %v1120_v52, %v907_v61 }
 0x7fa   :  { %v912_v6 = vsel %vm911_vm13, %v1120_v52, %v908_v3 }
 0x7fb   :  { %v917_v56 = vsel %vm914_vm15, %v916_v53, %v912_v6 }
 0x7fc   :  { %v920_v8 = vmul.f32 %v917_v56, %v878_v38 }
 0x832   :  { %v924_v28 = vpop.permute.xlu2 %923 }
 0x833   :  { %v929_v7 = vmul.f32 %v924_v28, %v919_v5 }
 0x835   :  { %1034 = vmatmul.msk.f32.vlgmr.msrb.gmra.mxu2 %vm939_vm14, %v929_v7 }
 0x83a   :  { %v926_v2 = vpop.permute.xlu2 %925 }
 0x83b   :  { %v930_v9 = vmul.f32 %v926_v2, %v920_v8 }
 0x83d   :  { %1035 = vmatmul.msk.f32.gmra.mxu2 %vm939_vm14, %v930_v9 }
 0x8b8   :  { %v963_v10 = vpop.f32.mrf.mxu2 }
 0x8b9   :  { %v969_v11 = vadd.f32 %v963_v10, %v1529_v58 }
 0x8bb   :  { %971 = vst.msk [vmem:[#allocation10] sm:$0xff] %vm105_vm0, %v969_v11 }
 0x8c0   :  { %v966_v12 = vpop.f32.mrf.mxu2 }
 0x8c1   :  { %v970_v13 = vadd.f32 %v966_v12, %v1536_v24 }
 0x8c3   :  { %972 = vst.msk [vmem:[#allocation10 + $0x8] sm:$0xff] %vm105_vm0, %v970_v13 }
 0x8c4   :  { %985 = dma.vmem_to_hbm [thread:$0]  %s978_s28, 256, %s980_s10, [#allocation4], %s1250_s17, %s1250_s17, %s1251_s18  }
 0x8c5   :  { %1247 = dma.done.wait [#allocation4], 256  }
 0x8c6   :  { %1248 = vsyncadd [#allocation4], 4294967040 }
 0x8c7   :  { %990 = vsyncpa [#allocation3], 1 }
 0x8c8   :  { %991 = vsyncpa [#allocation6], 1 }
 0x8c9   :  { %992 = vsyncpa [#allocation9], 1 }
 0x8ca   :  { %993 = vsyncpa [#allocation4], 1 }

</bundles_post_ra>
